<compile_context>
chip_gen: v7x
topology: tpu7x:2x2x1
jax: 0.10.0
libtpu: 0.0.40
codegen_flags: <defaults>
</compile_context>

<pallas_src>
import functools

import jax
import jax.numpy as jnp
from jax import lax
from jax.experimental import pallas as pl
from jax.experimental.pallas import tpu as pltpu

_BN_EPS = 1e-5
_LANE = 128


def _round_up(x, m):
    return (x + m - 1) // m * m


def _cdiv(a, b):
    return -(-a // b)


def _vmem_capacity_bytes():
    try:
        info = pltpu.get_tpu_info()
        for name in ("vmem_capacity_bytes", "vmem_bytes", "vmem_size_bytes"):
            v = getattr(info, name, None)
            if v:
                return int(v)
    except Exception:
        pass
    return 64 << 20  # conservative default (v7x-sized)


# ----------------------------------------------------------------------------
# Fused BasicBlock kernel (one (batch, L-tile) grid point per invocation)
# ----------------------------------------------------------------------------
def _make_fused_kernel(*, K, stride, tl, win_q, cin_p, cout_p, Lout,
                       has_sc_conv, compute_dtype):
    """Input window layout: xbuf row q, channel slab p (p in [0, stride)) holds the
    zero-padded input at padded position (t*tl + q)*stride + p, where the pad offset
    is stride+1.  conv1 output j = t*tl - 1 + i (i in [0, tl+2)) for tap k therefore
    reads window row i + k//stride, slab k%stride — a static contiguous slice."""
    sc_off = 1 + 1 // stride          # shortcut (1x1, stride s, pad 0) row offset
    sc_ph = 1 % stride                # shortcut channel slab

    def kernel(*refs):
        if has_sc_conv:
            (x_hbm, w1_ref, s1_ref, b1_ref, w2_ref, s2_ref, b2_ref,
             ws_ref, ss_ref, bs_ref, o_ref, xbuf, sem) = refs
        else:
            (x_hbm, w1_ref, s1_ref, b1_ref, w2_ref, s2_ref, b2_ref,
             o_ref, xbuf, sem) = refs

        b = pl.program_id(0)
        t = pl.program_id(1)
        n_t = pl.num_programs(1)
        slot = t % 2

        def start_fetch(start_row, dst_slot):
            pltpu.make_async_copy(
                x_hbm.at[b, pl.ds(start_row, win_q), :],
                xbuf.at[dst_slot], sem.at[dst_slot]).start()

        # Prime the pipeline at the first tile of each batch row.
        @pl.when(t == 0)
        def _():
            start_fetch(0, 0)

        # Wait for the current tile's halo window.
        pltpu.make_async_copy(x_hbm.at[b, pl.ds(0, win_q), :],
                              xbuf.at[slot], sem.at[slot]).wait()

        # Prefetch the next tile of this batch row (t axis is "arbitrary" => in-order).
        @pl.when(t + 1 < n_t)
        def _():
            start_fetch(pl.multiple_of((t + 1) * tl, 8), 1 - slot)

        x2d = xbuf[slot]                                   # (win_q, stride*cin_p)

        # ---- conv1 (K shifted MXU dots) + bn1 + relu on tl+2 rows (conv2 halo) ----
        acc1 = None
        for k in range(K):
            off = k // stride
            c0 = (k % stride) * cin_p
            term = jnp.dot(x2d[off:off + tl + 2, c0:c0 + cin_p], w1_ref[k],
                           preferred_element_type=jnp.float32)
            acc1 = term if acc1 is None else acc1 + term
        h = jnp.maximum(acc1 * s1_ref[...] + b1_ref[...], 0.0)

        # conv2 zero padding: conv1 rows whose global position j is outside [0, Lout)
        # (sequence edges and the L-tile rounding overhang) must act as zeros.
        j = t * tl - 1 + lax.broadcasted_iota(jnp.int32, (tl + 2, 1), 0)
        h = jnp.where((j >= 0) & (j < Lout), h, 0.0)
        h_c = h.astype(compute_dtype)

        # ---- conv2 (K shifted dots, stride 1) + bn2 ----
        acc2 = None
        for k in range(K):
            term = jnp.dot(h_c[k:k + tl, :], w2_ref[k],
                           preferred_element_type=jnp.float32)
            acc2 = term if acc2 is None else acc2 + term
        y = acc2 * s2_ref[...] + b2_ref[...]

        # ---- shortcut (1x1 conv + bn, or identity) from the same input window ----
        xs = x2d[sc_off:sc_off + tl, sc_ph * cin_p:sc_ph * cin_p + cin_p]
        if has_sc_conv:
            sc = jnp.dot(xs, ws_ref[...], preferred_element_type=jnp.float32)
            sc = sc * ss_ref[...] + bs_ref[...]
        else:
            sc = xs.astype(jnp.float32)

        o_ref[...] = jnp.maximum(y + sc, 0.0).astype(o_ref.dtype)

    return kernel


# ----------------------------------------------------------------------------
# BasicBlock forward (channels-last core + PyTorch-layout wrapper)
# ----------------------------------------------------------------------------
def _bn_fold(gamma, beta, mean, var, eps=_BN_EPS):
    scale = gamma / jnp.sqrt(var + eps)
    bias = beta - mean * scale
    return scale, bias


def basic_block_forward_nlc(params, x_nlc, *, in_planes, planes, stride,
                            compute_dtype=jnp.bfloat16, out_dtype=None,
                            max_l_tile=None):
    """Channels-last BasicBlock forward: (B, L, in_planes) -> (B, Lout, planes)."""
    B, L, Cin = x_nlc.shape
    assert Cin == in_planes
    K, s = 3, stride
    out_dtype = x_nlc.dtype if out_dtype is None else out_dtype
    has_sc_conv = (stride != 1) or (in_planes != planes)

    cin_p = _round_up(Cin, _LANE)
    cout_p = _round_up(planes, _LANE)
    if not has_sc_conv:
        assert cin_p == cout_p

    Lout = (L + 2 - K) // s + 1
    in_isz = jnp.dtype(compute_dtype).itemsize
    out_isz = jnp.dtype(out_dtype).itemsize

    # Generation-aware budgets (v5e/v6e: 128 MiB VMEM; v7x: 64 MiB).
    vmem_cap = _vmem_capacity_bytes()
    if vmem_cap >= (100 << 20):
        ws_budget, vmem_max = 28 << 20, 96 << 20
    else:
        ws_budget, vmem_max = 12 << 20, 44 << 20

    row_align = 16 if in_isz < 4 else 8
    w_bytes = (K * cin_p * cout_p + K * cout_p * cout_p
               + (cin_p * cout_p if has_sc_conv else 0)) * in_isz

    # Largest power-of-two L-tile whose fused working set fits the budget.
    cap = max(8, _round_up(Lout, 8))
    tl = 2048
    while tl > 8:
        if tl <= cap:
            win = _round_up(tl + 2 + 2 // s, row_align)
            work = (2 * win * s * cin_p * in_isz            # input window (2 slots)
                    + 2 * tl * cout_p * out_isz             # output double buffer
                    + 2 * w_bytes                           # stationary weights
                    + 6 * (tl + 8) * cout_p * 4)            # f32 intermediates
            if work <= ws_budget:
                break
        tl //= 2
    tl = min(tl, cap)
    if max_l_tile is not None:
        tl = min(tl, max(8, max_l_tile - max_l_tile % 8))
    n_t = _cdiv(Lout, tl)
    lout_p = n_t * tl
    win_q = _round_up(tl + 2 + 2 // s, row_align)

    # Zero-pad once along L (+ channel lane pad) and fold the stride phases into the
    # channel axis — a pure reshape, no duplication, no gather.
    lp_rows = (n_t - 1) * tl + win_q
    Lp = lp_rows * s
    left = s + 1
    right = Lp - L - left
    assert right >= 0
    xph = jnp.pad(x_nlc.astype(compute_dtype),
                  ((0, 0), (left, right), (0, cin_p - Cin)))
    xph = xph.reshape(B, lp_rows, s * cin_p)

    def prep_w(w_pt):                 # (Cout, Ci, K) -> (K, round_up(Ci), cout_p)
        Co, Ci, _ = w_pt.shape
        w = jnp.transpose(w_pt, (2, 1, 0))
        return jnp.pad(w, ((0, 0), (0, _round_up(Ci, _LANE) - Ci),
                           (0, cout_p - Co))).astype(compute_dtype)

    def prep_bn(gamma, beta, mean, var):
        scale, bias = _bn_fold(gamma, beta, mean, var)
        scale = jnp.pad(scale.astype(jnp.float32), (0, cout_p - planes))
        bias = jnp.pad(bias.astype(jnp.float32), (0, cout_p - planes))
        return scale.reshape(1, cout_p), bias.reshape(1, cout_p)

    w1 = prep_w(params["conv1_w"])                          # (3, cin_p, cout_p)
    w2 = prep_w(params["conv2_w"])                          # (3, cout_p, cout_p)
    s1, b1 = prep_bn(params["bn1_gamma"], params["bn1_beta"],
                     params["bn1_mean"], params["bn1_var"])
    s2, b2 = prep_bn(params["bn2_gamma"], params["bn2_beta"],
                     params["bn2_mean"], params["bn2_var"])

    args = [xph, w1, s1, b1, w2, s2, b2]
    in_specs = [
        pl.BlockSpec(memory_space=pl.ANY),                  # raw HBM, manual halo DMA
        pl.BlockSpec((K, cin_p, cout_p), lambda b, t: (0, 0, 0)),   # weight-stationary
        pl.BlockSpec((1, cout_p), lambda b, t: (0, 0)),
        pl.BlockSpec((1, cout_p), lambda b, t: (0, 0)),
        pl.BlockSpec((K, cout_p, cout_p), lambda b, t: (0, 0, 0)),
        pl.BlockSpec((1, cout_p), lambda b, t: (0, 0)),
        pl.BlockSpec((1, cout_p), lambda b, t: (0, 0)),
    ]
    if has_sc_conv:
        ws = prep_w(params["convs_w"])[0]                   # (cin_p, cout_p)
        ss, bs = prep_bn(params["bns_gamma"], params["bns_beta"],
                         params["bns_mean"], params["bns_var"])
        args += [ws, ss, bs]
        in_specs += [
            pl.BlockSpec((cin_p, cout_p), lambda b, t: (0, 0)),
            pl.BlockSpec((1, cout_p), lambda b, t: (0, 0)),
            pl.BlockSpec((1, cout_p), lambda b, t: (0, 0)),
        ]

    kernel = _make_fused_kernel(K=K, stride=s, tl=tl, win_q=win_q, cin_p=cin_p,
                                cout_p=cout_p, Lout=Lout, has_sc_conv=has_sc_conv,
                                compute_dtype=compute_dtype)

    vmem_est = (2 * win_q * s * cin_p * in_isz + 2 * w_bytes
                + 2 * tl * cout_p * out_isz + win_q * s * cin_p * in_isz
                + 6 * (tl + 8) * cout_p * 4 + 12 * cout_p * 4 + (6 << 20))
    vmem_limit = int(min(max(vmem_est, 32 << 20), vmem_max))

    flops = 2 * B * lout_p * cout_p * (K * cin_p + K * cout_p
                                       + (cin_p if has_sc_conv else 0))
    bytes_accessed = int(xph.size * in_isz + w_bytes + 12 * cout_p * 4
                         + B * lout_p * cout_p * out_isz)
    cost = pl.CostEstimate(flops=int(flops), transcendentals=0,
                           bytes_accessed=bytes_accessed)

    out = pl.pallas_call(
        kernel,
        out_shape=jax.ShapeDtypeStruct((B, lout_p, cout_p), out_dtype),
        grid=(B, n_t),
        in_specs=in_specs,
        out_specs=pl.BlockSpec((None, tl, cout_p), lambda b, t: (b, t, 0)),
        scratch_shapes=[pltpu.VMEM((2, win_q, s * cin_p), compute_dtype),
                        pltpu.SemaphoreType.DMA((2,))],
        compiler_params=pltpu.CompilerParams(
            # batch axis "parallel" (megacore / v7x 2-TC); tile axis must stay
            # "arbitrary" (in-order) for the cross-tile DMA prefetch chain.
            dimension_semantics=("parallel", "arbitrary"),
            vmem_limit_bytes=vmem_limit),
        cost_estimate=cost,
    )(*args)

    return out[:, :Lout, :planes]


def basic_block_forward(params, x_ncl, *, in_planes, planes, stride,
                        compute_dtype=jnp.bfloat16, out_dtype=None, max_l_tile=None):
    """x_ncl: (B, C_in, L) PyTorch layout.  Returns (B, planes, L_out).
    (In a stack of blocks, prefer basic_block_forward_nlc to avoid per-block
    transposes.)"""
    x_nlc = jnp.transpose(x_ncl, (0, 2, 1))
    out = basic_block_forward_nlc(params, x_nlc, in_planes=in_planes, planes=planes,
                                  stride=stride, compute_dtype=compute_dtype,
                                  out_dtype=out_dtype, max_l_tile=max_l_tile)
    return jnp.transpose(out, (0, 2, 1))


# ----------------------------------------------------------------------------
# Params init + pure-JAX reference (lax.conv) for correctness checking
# ----------------------------------------------------------------------------
def init_basic_block(key, in_planes, planes, stride):
    ks = jax.random.split(key, 12)
    p = {
        "conv1_w": 0.1 * jax.random.normal(ks[0], (planes, in_planes, 3), jnp.float32),
        "bn1_gamma": 1.0 + 0.1 * jax.random.normal(ks[1], (planes,), jnp.float32),
        "bn1_beta": 0.1 * jax.random.normal(ks[2], (planes,), jnp.float32),
        "bn1_mean": 0.05 * jax.random.normal(ks[3], (planes,), jnp.float32),
        "bn1_var": jax.random.uniform(ks[4], (planes,), jnp.float32, 0.5, 1.5),
        "conv2_w": 0.1 * jax.random.normal(ks[5], (planes, planes, 3), jnp.float32),
        "bn2_gamma": 1.0 + 0.1 * jax.random.normal(ks[6], (planes,), jnp.float32),
        "bn2_beta": 0.1 * jax.random.normal(ks[7], (planes,), jnp.float32),
        "bn2_mean": 0.05 * jax.random.normal(ks[8], (planes,), jnp.float32),
        "bn2_var": jax.random.uniform(ks[9], (planes,), jnp.float32, 0.5, 1.5),
    }
    if stride != 1 or in_planes != planes:
        ks2 = jax.random.split(ks[10], 5)
        p["convs_w"] = 0.1 * jax.random.normal(ks2[0], (planes, in_planes, 1), jnp.float32)
        p["bns_gamma"] = 1.0 + 0.1 * jax.random.normal(ks2[1], (planes,), jnp.float32)
        p["bns_beta"] = 0.1 * jax.random.normal(ks2[2], (planes,), jnp.float32)
        p["bns_mean"] = 0.05 * jax.random.normal(ks2[3], (planes,), jnp.float32)
        p["bns_var"] = jax.random.uniform(ks2[4], (planes,), jnp.float32, 0.5, 1.5)
    return p


def _ref_conv1d(x_ncl, w, stride, padding):
    return jax.lax.conv_general_dilated(
        x_ncl, w, window_strides=(stride,), padding=[(padding, padding)],
        dimension_numbers=("NCH", "OIH", "NCH"))


def _ref_bn(y_ncl, gamma, beta, mean, var):
    s, b = _bn_fold(gamma, beta, mean, var)
    return y_ncl * s[None, :, None] + b[None, :, None]


def basic_block_ref(params, x_ncl, *, in_planes, planes, stride):
    out = _ref_conv1d(x_ncl, params["conv1_w"], stride, 1)
    out = jax.nn.relu(_ref_bn(out, params["bn1_gamma"], params["bn1_beta"],
                              params["bn1_mean"], params["bn1_var"]))
    out = _ref_conv1d(out, params["conv2_w"], 1, 1)
    out = _ref_bn(out, params["bn2_gamma"], params["bn2_beta"],
                  params["bn2_mean"], params["bn2_var"])
    if stride != 1 or in_planes != planes:
        sc = _ref_conv1d(x_ncl, params["convs_w"], stride, 0)
        sc = _ref_bn(sc, params["bns_gamma"], params["bns_beta"],
                     params["bns_mean"], params["bns_var"])
    else:
        sc = x_ncl
    return jax.nn.relu(out + sc)


if __name__ == "__main__":
    key = jax.random.PRNGKey(0)

    # Config 1: downsampling block (stride=2, channel change) -> conv shortcut path.
    B, in_planes, planes, L, stride = 2, 4, 8, 16, 2
    k_params, k_x, k_rest = jax.random.split(key, 3)
    params = init_basic_block(k_params, in_planes, planes, stride)
    x = jax.random.normal(k_x, (B, in_planes, L), jnp.float32)     # PyTorch NCL layout

    fwd = functools.partial(basic_block_forward, in_planes=in_planes, planes=planes,
                            stride=stride)
    ref = jax.block_until_ready(
        basic_block_ref(params, x, in_planes=in_planes, planes=planes, stride=stride))

    out_f32 = jax.block_until_ready(
        jax.jit(functools.partial(fwd, compute_dtype=jnp.float32))(params, x))
    assert out_f32.shape == (B, planes, (L + 2 - 3) // stride + 1), out_f32.shape
    assert jnp.allclose(out_f32, ref, atol=5e-4, rtol=5e-4), \
        float(jnp.abs(out_f32 - ref).max())

    out_bf16 = jax.block_until_ready(
        jax.jit(functools.partial(fwd, compute_dtype=jnp.bfloat16))(params, x))
    assert jnp.allclose(out_bf16, ref, atol=5e-2, rtol=5e-2), \
        float(jnp.abs(out_bf16 - ref).max())

    # Config 2: identity-shortcut block (stride=1, same planes), single L-tile.
    B2, planes2, L2 = 2, 8, 16
    kp2, kx2, kp3, kx3 = jax.random.split(k_rest, 4)
    params2 = init_basic_block(kp2, planes2, planes2, 1)
    x2 = jax.random.normal(kx2, (B2, planes2, L2), jnp.float32)
    ref2 = jax.block_until_ready(
        basic_block_ref(params2, x2, in_planes=planes2, planes=planes2, stride=1))
    out2 = jax.block_until_ready(
        basic_block_forward(params2, x2, in_planes=planes2, planes=planes2, stride=1,
                            compute_dtype=jnp.float32))
    assert out2.shape == (B2, planes2, L2), out2.shape
    assert jnp.allclose(out2, ref2, atol=5e-4, rtol=5e-4), \
        float(jnp.abs(out2 - ref2).max())

    # Config 3: multi-tile identity block (forces the in-kernel halo DMA pipeline).
    L3 = 40
    x3 = jax.random.normal(kx3, (B2, planes2, L3), jnp.float32)
    ref3 = jax.block_until_ready(
        basic_block_ref(params2, x3, in_planes=planes2, planes=planes2, stride=1))
    out3 = jax.block_until_ready(
        basic_block_forward(params2, x3, in_planes=planes2, planes=planes2, stride=1,
                            compute_dtype=jnp.float32, max_l_tile=8))
    assert out3.shape == (B2, planes2, L3), out3.shape
    assert jnp.allclose(out3, ref3, atol=5e-4, rtol=5e-4), \
        float(jnp.abs(out3 - ref3).max())

    # Config 4: multi-tile strided block with conv shortcut (+ tile-rounding overhang).
    L4 = 40
    params4 = init_basic_block(kp3, in_planes, planes, 2)
    x4 = jax.random.normal(jax.random.fold_in(kx3, 1), (B, in_planes, L4), jnp.float32)
    ref4 = jax.block_until_ready(
        basic_block_ref(params4, x4, in_planes=in_planes, planes=planes, stride=2))
    out4 = jax.block_until_ready(
        basic_block_forward(params4, x4, in_planes=in_planes, planes=planes, stride=2,
                            compute_dtype=jnp.float32, max_l_tile=8))
    assert out4.shape == (B, planes, (L4 + 2 - 3) // 2 + 1), out4.shape
    assert jnp.allclose(out4, ref4, atol=5e-4, rtol=5e-4), \
        float(jnp.abs(out4 - ref4).max())

    print("KERNEL_OK")
</pallas_src>

<mosaic_0001>
module attributes {stable_mosaic.version = 11 : i64} {
  func.func @kernel(%arg0: i32, %arg1: i32, %arg2: memref<2x16x256xf32, #tpu.memory_space<any>>, %arg3: memref<3x128x128xf32, #tpu.memory_space<vmem>>, %arg4: memref<1x128xf32, #tpu.memory_space<vmem>>, %arg5: memref<1x128xf32, #tpu.memory_space<vmem>>, %arg6: memref<3x128x128xf32, #tpu.memory_space<vmem>>, %arg7: memref<1x128xf32, #tpu.memory_space<vmem>>, %arg8: memref<1x128xf32, #tpu.memory_space<vmem>>, %arg9: memref<128x128xf32, #tpu.memory_space<vmem>>, %arg10: memref<1x128xf32, #tpu.memory_space<vmem>>, %arg11: memref<1x128xf32, #tpu.memory_space<vmem>>, %arg12: memref<1x8x128xf32, #tpu.memory_space<vmem>>, %arg13: memref<2x16x256xf32, #tpu.memory_space<vmem>>, %arg14: memref<2x!tpu.dma_semaphore, #tpu.memory_space<semaphore_mem>>) attributes {dimension_semantics = [#tpu.dimension_semantics<parallel>, #tpu.dimension_semantics<arbitrary>], iteration_bounds = array<i64: 2, 1>, scalar_prefetch = 0 : i64, scratch_operands = 2 : i64, tpu.core_type = #tpu.core_type<tc>, window_params = [{}, {pipeline_mode = #tpu.pipeline_mode<synchronous>, transform_indices = @transform_1, window_bounds = array<i64: 3, 128, 128>}, {pipeline_mode = #tpu.pipeline_mode<synchronous>, transform_indices = @transform_2, window_bounds = array<i64: 1, 128>}, {pipeline_mode = #tpu.pipeline_mode<synchronous>, transform_indices = @transform_3, window_bounds = array<i64: 1, 128>}, {pipeline_mode = #tpu.pipeline_mode<synchronous>, transform_indices = @transform_4, window_bounds = array<i64: 3, 128, 128>}, {pipeline_mode = #tpu.pipeline_mode<synchronous>, transform_indices = @transform_5, window_bounds = array<i64: 1, 128>}, {pipeline_mode = #tpu.pipeline_mode<synchronous>, transform_indices = @transform_6, window_bounds = array<i64: 1, 128>}, {pipeline_mode = #tpu.pipeline_mode<synchronous>, transform_indices = @transform_7, window_bounds = array<i64: 128, 128>}, {pipeline_mode = #tpu.pipeline_mode<synchronous>, transform_indices = @transform_8, window_bounds = array<i64: 1, 128>}, {pipeline_mode = #tpu.pipeline_mode<synchronous>, transform_indices = @transform_9, window_bounds = array<i64: 1, 128>}, {transform_indices = @transform_10, window_bounds = array<i64: 1, 8, 128>}]} {
    %c2_i32 = arith.constant 2 : i32
    %c0_i32 = arith.constant 0 : i32
    %0 = arith.cmpi eq, %c2_i32, %c0_i32 : i32
    %c1_i32 = arith.constant 1 : i32
    %1 = arith.select %0, %c1_i32, %c2_i32 : i32
    %2 = arith.remsi %arg1, %1 : i32
    %c0_i32_0 = arith.constant 0 : i32
    %3 = arith.cmpi ne, %2, %c0_i32_0 : i32
    %c0_i32_1 = arith.constant 0 : i32
    %4 = arith.cmpi slt, %2, %c0_i32_1 : i32
    %c0_i32_2 = arith.constant 0 : i32
    %5 = arith.cmpi slt, %1, %c0_i32_2 : i32
    %6 = arith.xori %4, %5 : i1
    %7 = arith.andi %6, %3 : i1
    %8 = arith.addi %2, %1 : i32
    %9 = arith.select %7, %8, %2 : i32
    %c0_i32_3 = arith.constant 0 : i32
    %10 = arith.cmpi eq, %arg1, %c0_i32_3 : i32
    %11 = arith.extui %10 : i1 to i32
    %c0_i32_4 = arith.constant 0 : i32
    %12 = arith.cmpi ne, %11, %c0_i32_4 : i32
    scf.if %12 {
      %c0_i32_58 = arith.constant 0 : i32
      %c0_i32_59 = arith.constant 0 : i32
      %c0_i32_60 = arith.constant 0 : i32
      %c0_i32_61 = arith.constant 0 : i32
      %97 = tpu.memref_slice %arg2[%arg0, %c0_i32_60, %c0_i32_61] : memref<2x16x256xf32, #tpu.memory_space<any>> -> memref<1x16x256xf32, #tpu.memory_space<any>>
      %98 = tpu.memref_squeeze %97 : memref<1x16x256xf32, #tpu.memory_space<any>> -> memref<16x256xf32, #tpu.memory_space<any>>
      %c0_i32_62 = arith.constant 0 : i32
      %c0_i32_63 = arith.constant 0 : i32
      %99 = tpu.memref_slice %arg13[%c0_i32_58, %c0_i32_62, %c0_i32_63] : memref<2x16x256xf32, #tpu.memory_space<vmem>> -> memref<1x16x256xf32, #tpu.memory_space<vmem>>
      %100 = tpu.memref_squeeze %99 : memref<1x16x256xf32, #tpu.memory_space<vmem>> -> memref<16x256xf32, #tpu.memory_space<vmem>>
      %101 = tpu.memref_slice %arg14[%c0_i32_59] : memref<2x!tpu.dma_semaphore, #tpu.memory_space<semaphore_mem>> -> memref<1x!tpu.dma_semaphore, #tpu.memory_space<semaphore_mem>>
      %102 = tpu.memref_squeeze %101 : memref<1x!tpu.dma_semaphore, #tpu.memory_space<semaphore_mem>> -> memref<!tpu.dma_semaphore, #tpu.memory_space<semaphore_mem>>
      tpu.enqueue_dma source(%98 : memref<16x256xf32, #tpu.memory_space<any>>) target(%100 : memref<16x256xf32, #tpu.memory_space<vmem>>) target_semaphore(%102 : memref<!tpu.dma_semaphore, #tpu.memory_space<semaphore_mem>>)
    } else {
    }
    %c0_i32_5 = arith.constant 0 : i32
    %c0_i32_6 = arith.constant 0 : i32
    %13 = tpu.memref_slice %arg2[%arg0, %c0_i32_5, %c0_i32_6] : memref<2x16x256xf32, #tpu.memory_space<any>> -> memref<1x16x256xf32, #tpu.memory_space<any>>
    %14 = tpu.memref_squeeze %13 : memref<1x16x256xf32, #tpu.memory_space<any>> -> memref<16x256xf32, #tpu.memory_space<any>>
    %c0_i32_7 = arith.constant 0 : i32
    %c0_i32_8 = arith.constant 0 : i32
    %15 = tpu.memref_slice %arg13[%9, %c0_i32_7, %c0_i32_8] : memref<2x16x256xf32, #tpu.memory_space<vmem>> -> memref<1x16x256xf32, #tpu.memory_space<vmem>>
    %16 = tpu.memref_squeeze %15 : memref<1x16x256xf32, #tpu.memory_space<vmem>> -> memref<16x256xf32, #tpu.memory_space<vmem>>
    %17 = tpu.memref_slice %arg14[%9] : memref<2x!tpu.dma_semaphore, #tpu.memory_space<semaphore_mem>> -> memref<1x!tpu.dma_semaphore, #tpu.memory_space<semaphore_mem>>
    %18 = tpu.memref_squeeze %17 : memref<1x!tpu.dma_semaphore, #tpu.memory_space<semaphore_mem>> -> memref<!tpu.dma_semaphore, #tpu.memory_space<semaphore_mem>>
    tpu.wait_dma2 semaphore(%18 : memref<!tpu.dma_semaphore, #tpu.memory_space<semaphore_mem>>) src(%14 : memref<16x256xf32, #tpu.memory_space<any>>) dst(%16 : memref<16x256xf32, #tpu.memory_space<vmem>>)
    %c1_i32_9 = arith.constant 1 : i32
    %19 = arith.addi %arg1, %c1_i32_9 : i32
    %c1_i32_10 = arith.constant 1 : i32
    %20 = arith.cmpi slt, %19, %c1_i32_10 : i32
    %21 = arith.extui %20 : i1 to i32
    %c0_i32_11 = arith.constant 0 : i32
    %22 = arith.cmpi ne, %21, %c0_i32_11 : i32
    scf.if %22 {
      %c1_i32_58 = arith.constant 1 : i32
      %97 = arith.addi %arg1, %c1_i32_58 : i32
      %c8_i32_59 = arith.constant 8 : i32
      %98 = arith.muli %97, %c8_i32_59 : i32
      %99 = tpu.assume_multiple %98, 8 : i32
      %c1_i32_60 = arith.constant 1 : i32
      %100 = arith.subi %c1_i32_60, %9 : i32
      %c0_i32_61 = arith.constant 0 : i32
      %101 = tpu.memref_slice %arg2[%arg0, %99, %c0_i32_61] : memref<2x16x256xf32, #tpu.memory_space<any>> -> memref<1x16x256xf32, #tpu.memory_space<any>>
      %102 = tpu.memref_squeeze %101 : memref<1x16x256xf32, #tpu.memory_space<any>> -> memref<16x256xf32, #tpu.memory_space<any>>
      %c0_i32_62 = arith.constant 0 : i32
      %c0_i32_63 = arith.constant 0 : i32
      %103 = tpu.memref_slice %arg13[%100, %c0_i32_62, %c0_i32_63] : memref<2x16x256xf32, #tpu.memory_space<vmem>> -> memref<1x16x256xf32, #tpu.memory_space<vmem>>
      %104 = tpu.memref_squeeze %103 : memref<1x16x256xf32, #tpu.memory_space<vmem>> -> memref<16x256xf32, #tpu.memory_space<vmem>>
      %105 = tpu.memref_slice %arg14[%100] : memref<2x!tpu.dma_semaphore, #tpu.memory_space<semaphore_mem>> -> memref<1x!tpu.dma_semaphore, #tpu.memory_space<semaphore_mem>>
      %106 = tpu.memref_squeeze %105 : memref<1x!tpu.dma_semaphore, #tpu.memory_space<semaphore_mem>> -> memref<!tpu.dma_semaphore, #tpu.memory_space<semaphore_mem>>
      tpu.enqueue_dma source(%102 : memref<16x256xf32, #tpu.memory_space<any>>) target(%104 : memref<16x256xf32, #tpu.memory_space<vmem>>) target_semaphore(%106 : memref<!tpu.dma_semaphore, #tpu.memory_space<semaphore_mem>>)
    } else {
    }
    %23 = arith.index_cast %9 : i32 to index
    %c0 = arith.constant 0 : index
    %c0_12 = arith.constant 0 : index
    %24 = vector.load %arg13[%23, %c0, %c0_12] : memref<2x16x256xf32, #tpu.memory_space<vmem>>, vector<1x16x256xf32>
    %25 = vector.shape_cast %24 : vector<1x16x256xf32> to vector<16x256xf32>
    %26 = vector.extract_strided_slice %25 {offsets = [0, 0], sizes = [10, 128], strides = [1, 1]} : vector<16x256xf32> to vector<10x128xf32>
    %c0_13 = arith.constant 0 : index
    %c0_14 = arith.constant 0 : index
    %c0_15 = arith.constant 0 : index
    %27 = vector.load %arg3[%c0_13, %c0_14, %c0_15] : memref<3x128x128xf32, #tpu.memory_space<vmem>>, vector<1x128x128xf32>
    %28 = vector.shape_cast %27 : vector<1x128x128xf32> to vector<128x128xf32>
    %cst = arith.constant dense<0.000000e+00> : vector<10x128xf32>
    %29 = tpu.matmul %26, %28, %cst {dimension_numbers = #tpu.dot_dimension_numbers<[1], [0], [0], [1], [0, 0, 1, 1], [], []>} : vector<10x128xf32>, vector<128x128xf32>, vector<10x128xf32> -> vector<10x128xf32>
    %30 = vector.extract_strided_slice %25 {offsets = [0, 128], sizes = [10, 128], strides = [1, 1]} : vector<16x256xf32> to vector<10x128xf32>
    %c1 = arith.constant 1 : index
    %c0_16 = arith.constant 0 : index
    %c0_17 = arith.constant 0 : index
    %31 = vector.load %arg3[%c1, %c0_16, %c0_17] : memref<3x128x128xf32, #tpu.memory_space<vmem>>, vector<1x128x128xf32>
    %32 = vector.shape_cast %31 : vector<1x128x128xf32> to vector<128x128xf32>
    %cst_18 = arith.constant dense<0.000000e+00> : vector<10x128xf32>
    %33 = tpu.matmul %30, %32, %cst_18 {dimension_numbers = #tpu.dot_dimension_numbers<[1], [0], [0], [1], [0, 0, 1, 1], [], []>} : vector<10x128xf32>, vector<128x128xf32>, vector<10x128xf32> -> vector<10x128xf32>
    %34 = arith.addf %29, %33 : vector<10x128xf32>
    %35 = vector.extract_strided_slice %25 {offsets = [1, 0], sizes = [10, 128], strides = [1, 1]} : vector<16x256xf32> to vector<10x128xf32>
    %c2 = arith.constant 2 : index
    %c0_19 = arith.constant 0 : index
    %c0_20 = arith.constant 0 : index
    %36 = vector.load %arg3[%c2, %c0_19, %c0_20] : memref<3x128x128xf32, #tpu.memory_space<vmem>>, vector<1x128x128xf32>
    %37 = vector.shape_cast %36 : vector<1x128x128xf32> to vector<128x128xf32>
    %cst_21 = arith.constant dense<0.000000e+00> : vector<10x128xf32>
    %38 = tpu.matmul %35, %37, %cst_21 {dimension_numbers = #tpu.dot_dimension_numbers<[1], [0], [0], [1], [0, 0, 1, 1], [], []>} : vector<10x128xf32>, vector<128x128xf32>, vector<10x128xf32> -> vector<10x128xf32>
    %39 = arith.addf %34, %38 : vector<10x128xf32>
    %c0_22 = arith.constant 0 : index
    %c0_23 = arith.constant 0 : index
    %40 = vector.load %arg4[%c0_22, %c0_23] : memref<1x128xf32, #tpu.memory_space<vmem>>, vector<1x128xf32>
    %41 = vector.broadcast %40 : vector<1x128xf32> to vector<10x128xf32>
    %42 = arith.mulf %39, %41 : vector<10x128xf32>
    %c0_24 = arith.constant 0 : index
    %c0_25 = arith.constant 0 : index
    %43 = vector.load %arg5[%c0_24, %c0_25] : memref<1x128xf32, #tpu.memory_space<vmem>>, vector<1x128xf32>
    %44 = vector.broadcast %43 : vector<1x128xf32> to vector<10x128xf32>
    %45 = arith.addf %42, %44 : vector<10x128xf32>
    %cst_26 = arith.constant 0.000000e+00 : f32
    %46 = vector.broadcast %cst_26 : f32 to vector<10x128xf32>
    %47 = arith.maximumf %45, %46 : vector<10x128xf32>
    %c8_i32 = arith.constant 8 : i32
    %48 = arith.muli %arg1, %c8_i32 : i32
    %c1_i32_27 = arith.constant 1 : i32
    %49 = arith.subi %48, %c1_i32_27 : i32
    %50 = tpu.iota {dimensions = array<i32: 0>} : vector<10x1xi32>
    %51 = vector.broadcast %49 : i32 to vector<10x1xi32>
    %52 = arith.addi %51, %50 : vector<10x1xi32>
    %c0_i32_28 = arith.constant 0 : i32
    %53 = vector.broadcast %c0_i32_28 : i32 to vector<10x1xi32>
    %54 = arith.cmpi sge, %52, %53 : vector<10x1xi32>
    %c8_i32_29 = arith.constant 8 : i32
    %55 = vector.broadcast %c8_i32_29 : i32 to vector<10x1xi32>
    %56 = arith.cmpi slt, %52, %55 : vector<10x1xi32>
    %57 = arith.andi %54, %56 : vector<10x1xi1>
    %cst_30 = arith.constant 0.000000e+00 : f32
    %58 = vector.shape_cast %57 : vector<10x1xi1> to vector<10x1xi1>
    %59 = vector.broadcast %58 : vector<10x1xi1> to vector<10x128xi1>
    %60 = vector.broadcast %cst_30 : f32 to vector<10x128xf32>
    %61 = arith.select %59, %47, %60 : vector<10x128xi1>, vector<10x128xf32>
    %62 = vector.extract_strided_slice %61 {offsets = [0, 0], sizes = [8, 128], strides = [1, 1]} : vector<10x128xf32> to vector<8x128xf32>
    %c0_31 = arith.constant 0 : index
    %c0_32 = arith.constant 0 : index
    %c0_33 = arith.constant 0 : index
    %63 = vector.load %arg6[%c0_31, %c0_32, %c0_33] : memref<3x128x128xf32, #tpu.memory_space<vmem>>, vector<1x128x128xf32>
    %64 = vector.shape_cast %63 : vector<1x128x128xf32> to vector<128x128xf32>
    %cst_34 = arith.constant dense<0.000000e+00> : vector<8x128xf32>
    %65 = tpu.matmul %62, %64, %cst_34 {dimension_numbers = #tpu.dot_dimension_numbers<[1], [0], [0], [1], [0, 0, 1, 1], [], []>} : vector<8x128xf32>, vector<128x128xf32>, vector<8x128xf32> -> vector<8x128xf32>
    %66 = vector.extract_strided_slice %61 {offsets = [1, 0], sizes = [8, 128], strides = [1, 1]} : vector<10x128xf32> to vector<8x128xf32>
    %c1_35 = arith.constant 1 : index
    %c0_36 = arith.constant 0 : index
    %c0_37 = arith.constant 0 : index
    %67 = vector.load %arg6[%c1_35, %c0_36, %c0_37] : memref<3x128x128xf32, #tpu.memory_space<vmem>>, vector<1x128x128xf32>
    %68 = vector.shape_cast %67 : vector<1x128x128xf32> to vector<128x128xf32>
    %cst_38 = arith.constant dense<0.000000e+00> : vector<8x128xf32>
    %69 = tpu.matmul %66, %68, %cst_38 {dimension_numbers = #tpu.dot_dimension_numbers<[1], [0], [0], [1], [0, 0, 1, 1], [], []>} : vector<8x128xf32>, vector<128x128xf32>, vector<8x128xf32> -> vector<8x128xf32>
    %70 = arith.addf %65, %69 : vector<8x128xf32>
    %71 = vector.extract_strided_slice %61 {offsets = [2, 0], sizes = [8, 128], strides = [1, 1]} : vector<10x128xf32> to vector<8x128xf32>
    %c2_39 = arith.constant 2 : index
    %c0_40 = arith.constant 0 : index
    %c0_41 = arith.constant 0 : index
    %72 = vector.load %arg6[%c2_39, %c0_40, %c0_41] : memref<3x128x128xf32, #tpu.memory_space<vmem>>, vector<1x128x128xf32>
    %73 = vector.shape_cast %72 : vector<1x128x128xf32> to vector<128x128xf32>
    %cst_42 = arith.constant dense<0.000000e+00> : vector<8x128xf32>
    %74 = tpu.matmul %71, %73, %cst_42 {dimension_numbers = #tpu.dot_dimension_numbers<[1], [0], [0], [1], [0, 0, 1, 1], [], []>} : vector<8x128xf32>, vector<128x128xf32>, vector<8x128xf32> -> vector<8x128xf32>
    %75 = arith.addf %70, %74 : vector<8x128xf32>
    %c0_43 = arith.constant 0 : index
    %c0_44 = arith.constant 0 : index
    %76 = vector.load %arg7[%c0_43, %c0_44] : memref<1x128xf32, #tpu.memory_space<vmem>>, vector<1x128xf32>
    %77 = vector.broadcast %76 : vector<1x128xf32> to vector<8x128xf32>
    %78 = arith.mulf %75, %77 : vector<8x128xf32>
    %c0_45 = arith.constant 0 : index
    %c0_46 = arith.constant 0 : index
    %79 = vector.load %arg8[%c0_45, %c0_46] : memref<1x128xf32, #tpu.memory_space<vmem>>, vector<1x128xf32>
    %80 = vector.broadcast %79 : vector<1x128xf32> to vector<8x128xf32>
    %81 = arith.addf %78, %80 : vector<8x128xf32>
    %82 = vector.extract_strided_slice %25 {offsets = [1, 128], sizes = [8, 128], strides = [1, 1]} : vector<16x256xf32> to vector<8x128xf32>
    %c0_47 = arith.constant 0 : index
    %c0_48 = arith.constant 0 : index
    %83 = vector.load %arg9[%c0_47, %c0_48] : memref<128x128xf32, #tpu.memory_space<vmem>>, vector<128x128xf32>
    %cst_49 = arith.constant dense<0.000000e+00> : vector<8x128xf32>
    %84 = tpu.matmul %82, %83, %cst_49 {dimension_numbers = #tpu.dot_dimension_numbers<[1], [0], [0], [1], [0, 0, 1, 1], [], []>} : vector<8x128xf32>, vector<128x128xf32>, vector<8x128xf32> -> vector<8x128xf32>
    %c0_50 = arith.constant 0 : index
    %c0_51 = arith.constant 0 : index
    %85 = vector.load %arg10[%c0_50, %c0_51] : memref<1x128xf32, #tpu.memory_space<vmem>>, vector<1x128xf32>
    %86 = vector.broadcast %85 : vector<1x128xf32> to vector<8x128xf32>
    %87 = arith.mulf %84, %86 : vector<8x128xf32>
    %c0_52 = arith.constant 0 : index
    %c0_53 = arith.constant 0 : index
    %88 = vector.load %arg11[%c0_52, %c0_53] : memref<1x128xf32, #tpu.memory_space<vmem>>, vector<1x128xf32>
    %89 = vector.broadcast %88 : vector<1x128xf32> to vector<8x128xf32>
    %90 = arith.addf %87, %89 : vector<8x128xf32>
    %91 = arith.addf %81, %90 : vector<8x128xf32>
    %cst_54 = arith.constant 0.000000e+00 : f32
    %92 = vector.broadcast %cst_54 : f32 to vector<8x128xf32>
    %93 = arith.maximumf %91, %92 : vector<8x128xf32>
    %c0_55 = arith.constant 0 : index
    %c0_56 = arith.constant 0 : index
    %c0_57 = arith.constant 0 : index
    %94 = vector.load %arg12[%c0_55, %c0_56, %c0_57] : memref<1x8x128xf32, #tpu.memory_space<vmem>>, vector<1x8x128xf32>
    %95 = vector.shape_cast %94 : vector<1x8x128xf32> to vector<8x128xf32>
    %96 = vector.shape_cast %93 : vector<8x128xf32> to vector<1x8x128xf32>
    tpu.vector_store %arg12[%c0_55, %c0_56, %c0_57], %96 {strides = array<i32>} : memref<1x8x128xf32, #tpu.memory_space<vmem>>, vector<1x8x128xf32>,
    return
  }
  func.func @transform_1(%arg0: i32, %arg1: i32) -> (i32, i32, i32) {
    %c0_i32 = arith.constant 0 : i32
    %c0_i32_0 = arith.constant 0 : i32
    %c0_i32_1 = arith.constant 0 : i32
    %c0_i32_2 = arith.constant 0 : i32
    return %c0_i32, %c0_i32_0, %c0_i32_1 : i32, i32, i32
  }
  func.func @transform_2(%arg0: i32, %arg1: i32) -> (i32, i32) {
    %c0_i32 = arith.constant 0 : i32
    %c0_i32_0 = arith.constant 0 : i32
    %c0_i32_1 = arith.constant 0 : i32
    return %c0_i32, %c0_i32_0 : i32, i32
  }
  func.func @transform_3(%arg0: i32, %arg1: i32) -> (i32, i32) {
    %c0_i32 = arith.constant 0 : i32
    %c0_i32_0 = arith.constant 0 : i32
    %c0_i32_1 = arith.constant 0 : i32
    return %c0_i32, %c0_i32_0 : i32, i32
  }
  func.func @transform_4(%arg0: i32, %arg1: i32) -> (i32, i32, i32) {
    %c0_i32 = arith.constant 0 : i32
    %c0_i32_0 = arith.constant 0 : i32
    %c0_i32_1 = arith.constant 0 : i32
    %c0_i32_2 = arith.constant 0 : i32
    return %c0_i32, %c0_i32_0, %c0_i32_1 : i32, i32, i32
  }
  func.func @transform_5(%arg0: i32, %arg1: i32) -> (i32, i32) {
    %c0_i32 = arith.constant 0 : i32
    %c0_i32_0 = arith.constant 0 : i32
    %c0_i32_1 = arith.constant 0 : i32
    return %c0_i32, %c0_i32_0 : i32, i32
  }
  func.func @transform_6(%arg0: i32, %arg1: i32) -> (i32, i32) {
    %c0_i32 = arith.constant 0 : i32
    %c0_i32_0 = arith.constant 0 : i32
    %c0_i32_1 = arith.constant 0 : i32
    return %c0_i32, %c0_i32_0 : i32, i32
  }
  func.func @transform_7(%arg0: i32, %arg1: i32) -> (i32, i32) {
    %c0_i32 = arith.constant 0 : i32
    %c0_i32_0 = arith.constant 0 : i32
    %c0_i32_1 = arith.constant 0 : i32
    return %c0_i32, %c0_i32_0 : i32, i32
  }
  func.func @transform_8(%arg0: i32, %arg1: i32) -> (i32, i32) {
    %c0_i32 = arith.constant 0 : i32
    %c0_i32_0 = arith.constant 0 : i32
    %c0_i32_1 = arith.constant 0 : i32
    return %c0_i32, %c0_i32_0 : i32, i32
  }
  func.func @transform_9(%arg0: i32, %arg1: i32) -> (i32, i32) {
    %c0_i32 = arith.constant 0 : i32
    %c0_i32_0 = arith.constant 0 : i32
    %c0_i32_1 = arith.constant 0 : i32
    return %c0_i32, %c0_i32_0 : i32, i32
  }
  func.func @transform_10(%arg0: i32, %arg1: i32) -> (i32, i32, i32) {
    %c0_i32 = arith.constant 0 : i32
    %c0_i32_0 = arith.constant 0 : i32
    return %arg0, %arg1, %c0_i32 : i32, i32, i32
  }
}

</mosaic_0001>

<bundles_post_ra>
// kernel: basic_block_forward.1
= control target key start
LH: loop header
LB: loop body
LE: loop exit
PB: predicated region body
PF: predicated region fallthrough
CT: control target
= control target key end

     0   :  { %s2072_s13 = smov 0   ;;  %s2074_s14 = smov 0   ;;  %s2531_s0 = inlined_call_operand.vmem [shape: f32[2,16,256], index: 0, kind: input, shape index: {}]   ;;  %s2532_s1 = inlined_call_operand.vmem [shape: f32[3,128,128], index: 1, kind: input, shape index: {}]   ;;  %s2533_s2 = inlined_call_operand.vmem [shape: f32[1,128], index: 2, kind: input, shape index: {}]   ;;  %s2534_s3 = inlined_call_operand.vmem [shape: f32[1,128], index: 3, kind: input, shape index: {}]   ;;  %s2535_s4 = inlined_call_operand.vmem [shape: f32[3,128,128], index: 4, kind: input, shape index: {}]   ;;  %s2536_s5 = inlined_call_operand.vmem [shape: f32[1,128], index: 5, kind: input, shape index: {}]   ;;  %s2537_s6 = inlined_call_operand.vmem [shape: f32[1,128], index: 6, kind: input, shape index: {}]   ;;  %s2538_s7 = inlined_call_operand.vmem [shape: f32[128,128], index: 7, kind: input, shape index: {}]   ;;  %s2539_s8 = inlined_call_operand.vmem [shape: f32[1,128], index: 8, kind: input, shape index: {}]   ;;  %s2540_s9 = inlined_call_operand.vmem [shape: f32[1,128], index: 9, kind: input, shape index: {}]   ;;  %s2541_s10 = inlined_call_operand.vmem [shape: f32[2,8,128], index: 10, kind: output, shape index: {}]  }
   0x1   :  { %s2076_s15 = smov 0  }
   0x2 LB: > { %s32_s16 = sadd.s32 1, %s2008_s14  ;;  %p1305_p0 = scmp.ge.s32.totalorder %s2012_s15, 1  ;;  %s2012_s15 = sphi %s2076_s15, %s20_s15   ;;  %s2008_s14 = sphi %s2074_s14, %s2543_s14   ;;  %s2004_s13 = sphi %s2072_s13, %s2542_s13  }
   0x3   : > { %p34_p1 = scmp.ge.s32.totalorder %s32_s16, 2  ;;  %p292_p2 = scmp.lt.s32.totalorder %s2012_s15, 3 }
   0x5   : > { %s2545_s16 = smov (%p34_p1, %s32_s16), 0  ;;  %p293_p3 = pnand %p1305_p0, %p292_p2 }
   0x6   : > { %p325_p4 = scmp.lt.s32.totalorder (!%p293_p3), %s2004_s13, 1  ;;  %s1391_s17 = sshll.u32 (!%p293_p3), %s2004_s13, 5 }
   0x7   : > { %296 = sbr.rel (%p293_p3) target bundleno = 626 (0x272), region = 56  ;;  %s350_s20 = scalar_lea.vmem (!%p293_p3), %s2531_s0, %s1391_s17 }
   0x8   : > { %v2093_v0 = vld [vmem:[%s350_s20] sm:$0xff] (!%p293_p3)  ;;  %v2095_v1 = vld [vmem:[%s350_s20 + $0x8] sm:$0xff] (!%p293_p3)  ;;  %v2097_v2 = vld [vmem:[%s350_s20 + $0x10] sm:$0xff] (!%p293_p3) }
   0x9   : > { %v2099_v3 = vld [vmem:[%s350_s20 + $0x18] sm:$0xff] (!%p293_p3) }
   0xe   : > { %s2547_s13 = smov (!%p325_p4, %s2004_s13), 1 }
   0xf   : > { %s1306_s21 = sshll.u32 %s2547_s13, 3 }
  0x10   : > { %s2104_s24 = scalar_lea.vmem %s2541_s10, %s1306_s21 }
  0x11   : > { %398 = vsyncadd [#allocation3], 512 }
  0x12   : > { %2000 = dma.done.wait [#allocation3], 512 }
  0x13   : > { %2001 = vsyncadd [#allocation3], 4294966784  ;;  %1548 = vmatprep.mubr.f32.mxu0 %v2095_v1  ;;  %v2014_v4 = vmov 0.0|0.0   ;;  %v1316_v5 = vld [vmem:[%s2532_s1 + $0x80] sm:$0xff]  ;;  %v1317_v6 = vld [vmem:[%s2532_s1 + $0x88] sm:$0xff]  ;;  %vm679_vm0 = vcmask 1046528  }
  0x14   : > { %1857 = vmatprep.subr.bf16.mxu1 %v2014_v4  ;;  %v1318_v7 = vld [vmem:[%s2532_s1 + $0x90] sm:$0xff]  ;;  %v1761_v8 = vpack.c.bf16 %v1317_v6, %v1316_v5  ;;  %v1319_v9 = vld [vmem:[%s2532_s1 + $0x98] sm:$0xff]  ;;  %v1320_v11 = vld [vmem:[%s2532_s1 + $0xa0] sm:$0xff]  ;;  %vm2015_vm1 = vmmov 0   ;;  %vm998_vm4 = vcmask 1045504  }
  0x15   : > { %v1765_v10 = vpack.c.bf16 %v1319_v9, %v1318_v7  ;;  %v1321_v12 = vld [vmem:[%s2532_s1 + $0xa8] sm:$0xff]  ;;  %v1322_v14 = vld [vmem:[%s2532_s1 + $0xb0] sm:$0xff]  ;;  %v1323_v15 = vld [vmem:[%s2532_s1 + $0xb8] sm:$0xff] }
  0x16   : > { %1762 = vmatprep.subr.bf16.mxu0 %v1761_v8  ;;  %v1769_v13 = vpack.c.bf16 %v1321_v12, %v1320_v11  ;;  %v1773_v16 = vpack.c.bf16 %v1323_v15, %v1322_v14  ;;  %v1324_v17 = vld [vmem:[%s2532_s1 + $0xc0] sm:$0xff]  ;;  %v1325_v18 = vld [vmem:[%s2532_s1 + $0xc8] sm:$0xff]  ;;  %v1326_v20 = vld [vmem:[%s2532_s1 + $0xd0] sm:$0xff]  ;;  %v680_v12 = vrot.slane %v2093_v0, 1 }
  0x17   : > { %1764 = vmatpush3.bf16.msra.mxu0 %v1761_v8  ;;  %v1777_v19 = vpack.c.bf16 %v1325_v18, %v1324_v17  ;;  %v1327_v21 = vld [vmem:[%s2532_s1 + $0xd8] sm:$0xff]  ;;  %v1350_v22 = vld [vmem:[%s2535_s4 + $0x80] sm:$0xff]  ;;  %v1351_v23 = vld [vmem:[%s2535_s4 + $0x88] sm:$0xff] }
  0x18   : > { %1766 = vmatprep.subr.bf16.mxu0 %v1765_v10  ;;  %v1352_v24 = vld [vmem:[%s2535_s4 + $0x90] sm:$0xff]  ;;  %v1781_v25 = vpack.c.bf16 %v1327_v21, %v1326_v20  ;;  %v1858_v26 = vpack.c.bf16 %v1351_v23, %v1350_v22  ;;  %v1353_v27 = vld [vmem:[%s2535_s4 + $0x98] sm:$0xff]  ;;  %v1328_v28 = vld [vmem:[%s2532_s1 + $0xe0] sm:$0xff] }
  0x19   : > { %v1329_v29 = vld [vmem:[%s2532_s1 + $0xe8] sm:$0xff]  ;;  %v1861_v30 = vpack.c.bf16 %v1353_v27, %v1352_v24  ;;  %v1354_v31 = vld [vmem:[%s2535_s4 + $0xa0] sm:$0xff]  ;;  %v1330_v34 = vld [vmem:[%s2532_s1 + $0xf0] sm:$0xff] }
  0x1a   : > { %1859 = vmatpush3.bf16.msra.mxu1 %v1858_v26  ;;  %v1355_v32 = vld [vmem:[%s2535_s4 + $0xa8] sm:$0xff]  ;;  %v1785_v33 = vpack.c.bf16 %v1329_v29, %v1328_v28  ;;  %v1331_v35 = vld [vmem:[%s2532_s1 + $0xf8] sm:$0xff]  ;;  %v1356_v37 = vld [vmem:[%s2535_s4 + $0xb0] sm:$0xff] }
  0x1b   : > { %1768 = vmatpush3.bf16.msra.mxu0 %v1765_v10  ;;  %1860 = vmatprep.subr.bf16.mxu1 %v2014_v4  ;;  %v1864_v36 = vpack.c.bf16 %v1355_v32, %v1354_v31  ;;  %v1357_v38 = vld [vmem:[%s2535_s4 + $0xb8] sm:$0xff]  ;;  %v1789_v39 = vpack.c.bf16 %v1331_v35, %v1330_v34  ;;  %v477_v40 = vld [vmem:[%s2532_s1] sm:$0xff]  ;;  %v478_v41 = vld [vmem:[%s2532_s1 + $0x8] sm:$0xff] }
  0x1c   : > { %1770 = vmatprep.subr.bf16.mxu0 %v1769_v13  ;;  %v1867_v42 = vpack.c.bf16 %v1357_v38, %v1356_v37  ;;  %v1358_v43 = vld [vmem:[%s2535_s4 + $0xc0] sm:$0xff]  ;;  %v1359_v44 = vld [vmem:[%s2535_s4 + $0xc8] sm:$0xff]  ;;  %v1793_v45 = vpack.c.bf16 %v478_v41, %v477_v40  ;;  %v479_v46 = vld [vmem:[%s2532_s1 + $0x10] sm:$0xff] }
  0x1d   : > { %v480_v47 = vld [vmem:[%s2532_s1 + $0x18] sm:$0xff]  ;;  %v1870_v48 = vpack.c.bf16 %v1359_v44, %v1358_v43  ;;  %v481_v50 = vld [vmem:[%s2532_s1 + $0x20] sm:$0xff]  ;;  %v482_v51 = vld [vmem:[%s2532_s1 + $0x28] sm:$0xff]  ;;  %v2016_v43 = vmov 0.0  }
  0x1e   : > { %1862 = vmatpush3.bf16.msra.mxu1 %v1861_v30  ;;  %v1797_v49 = vpack.c.bf16 %v480_v47, %v479_v46  ;;  %v1801_v52 = vpack.c.bf16 %v482_v51, %v481_v50  ;;  %v483_v53 = vld [vmem:[%s2532_s1 + $0x30] sm:$0xff]  ;;  %v484_v54 = vld [vmem:[%s2532_s1 + $0x38] sm:$0xff]  ;;  %v485_v56 = vld [vmem:[%s2532_s1 + $0x40] sm:$0xff]  ;;  %1653 = vmatprep.mubr.msk.f32.mxu1 %vm2015_vm1, %v2016_v43 }
  0x1f   : > { %1772 = vmatpush3.bf16.msra.mxu0 %v1769_v13  ;;  %1863 = vmatprep.subr.bf16.mxu1 %v2014_v4  ;;  %v1805_v55 = vpack.c.bf16 %v484_v54, %v483_v53  ;;  %v486_v57 = vld [vmem:[%s2532_s1 + $0x48] sm:$0xff]  ;;  %v487_v59 = vld [vmem:[%s2532_s1 + $0x50] sm:$0xff]  ;;  %v488_v60 = vld [vmem:[%s2532_s1 + $0x58] sm:$0xff]  ;;  %v681_v13 = vrot.slane %v2097_v2, 1 }
  0x20   : > { %1774 = vmatprep.subr.bf16.mxu0 %v1773_v16  ;;  %v1809_v58 = vpack.c.bf16 %v486_v57, %v485_v56  ;;  %v1813_v61 = vpack.c.bf16 %v488_v60, %v487_v59  ;;  %v489_v62 = vld [vmem:[%s2532_s1 + $0x60] sm:$0xff]  ;;  %v490_v63 = vld [vmem:[%s2532_s1 + $0x68] sm:$0xff]  ;;  %v491_v6 = vld [vmem:[%s2532_s1 + $0x70] sm:$0xff] }
  0x21   : > { %v1817_v5 = vpack.c.bf16 %v490_v63, %v489_v62  ;;  %v492_v7 = vld [vmem:[%s2532_s1 + $0x78] sm:$0xff]  ;;  %v1332_v9 = vld [vmem:[%s2532_s1 + $0x100] sm:$0xff]  ;;  %v1333_v10 = vld [vmem:[%s2532_s1 + $0x108] sm:$0xff]  ;;  %v682_v17 = vsel %vm679_vm0, %v680_v12, %v681_v13  ;;  %v784_v12 = vlaneseq }
  0x22   : > { %1865 = vmatpush3.bf16.msra.mxu1 %v1864_v36  ;;  %v1821_v8 = vpack.c.bf16 %v492_v7, %v491_v6  ;;  %v1825_v11 = vpack.c.bf16 %v1333_v10, %v1332_v9  ;;  %v1334_v14 = vld [vmem:[%s2532_s1 + $0x110] sm:$0xff]  ;;  %v1335_v15 = vld [vmem:[%s2532_s1 + $0x118] sm:$0xff]  ;;  %v1337_v18 = vld [vmem:[%s2532_s1 + $0x128] sm:$0xff]  ;;  %v1108_v9 = vrot.slane %v2095_v1, 1  ;;  %v1109_v10 = vrot.slane %v2099_v3, 1 }
  0x23   : > { %1776 = vmatpush3.bf16.msra.mxu0 %v1773_v16  ;;  %1866 = vmatprep.subr.bf16.mxu1 %v2014_v4  ;;  %v1829_v16 = vpack.c.bf16 %v1335_v15, %v1334_v14  ;;  %v1338_v20 = vld [vmem:[%s2532_s1 + $0x130] sm:$0xff]  ;;  %v1339_v21 = vld [vmem:[%s2532_s1 + $0x138] sm:$0xff]  ;;  %v1340_v23 = vld [vmem:[%s2532_s1 + $0x140] sm:$0xff] }
  0x24   : > { %1778 = vmatprep.subr.bf16.mxu0 %v1777_v19  ;;  %v1837_v22 = vpack.c.bf16 %v1339_v21, %v1338_v20  ;;  %v1343_v26 = vld [vmem:[%s2532_s1 + $0x158] sm:$0xff]  ;;  %v1344_v28 = vld [vmem:[%s2532_s1 + $0x160] sm:$0xff]  ;;  %v1345_v29 = vld [vmem:[%s2532_s1 + $0x168] sm:$0xff] }
  0x25   : > { %v1849_v30 = vpack.c.bf16 %v1345_v29, %v1344_v28  ;;  %v1346_v31 = vld [vmem:[%s2532_s1 + $0x170] sm:$0xff]  ;;  %v1347_v32 = vld [vmem:[%s2532_s1 + $0x178] sm:$0xff]  ;;  %v1362_v37 = vld [vmem:[%s2535_s4 + $0xe0] sm:$0xff] }
  0x26   : > { %1868 = vmatpush3.bf16.msra.mxu1 %v1867_v42  ;;  %v1360_v34 = vld [vmem:[%s2535_s4 + $0xd0] sm:$0xff]  ;;  %v1361_v35 = vld [vmem:[%s2535_s4 + $0xd8] sm:$0xff]  ;;  %v1363_v38 = vld [vmem:[%s2535_s4 + $0xe8] sm:$0xff] }
  0x27   : > { %1780 = vmatpush3.bf16.msra.mxu0 %v1777_v19  ;;  %1869 = vmatprep.subr.bf16.mxu1 %v2014_v4  ;;  %v1873_v36 = vpack.c.bf16 %v1361_v35, %v1360_v34  ;;  %v1364_v40 = vld [vmem:[%s2535_s4 + $0xf0] sm:$0xff]  ;;  %v1365_v41 = vld [vmem:[%s2535_s4 + $0xf8] sm:$0xff]  ;;  %v1090_v44 = vld [vmem:[%s2538_s7] sm:$0xff] }
  0x28   : > { %1782 = vmatprep.subr.bf16.mxu0 %v1781_v25  ;;  %v1879_v42 = vpack.c.bf16 %v1365_v41, %v1364_v40  ;;  %v1092_v47 = vld [vmem:[%s2538_s7 + $0x10] sm:$0xff]  ;;  %v1094_v50 = vld [vmem:[%s2538_s7 + $0x20] sm:$0xff]  ;;  %v1095_v51 = vld [vmem:[%s2538_s7 + $0x28] sm:$0xff] }
  0x29   : > { %v1096_v53 = vld [vmem:[%s2538_s7 + $0x30] sm:$0xff]  ;;  %v1097_v54 = vld [vmem:[%s2538_s7 + $0x38] sm:$0xff]  ;;  %v1098_v56 = vld [vmem:[%s2538_s7 + $0x40] sm:$0xff] }
  0x2a   : > { %1871 = vmatpush3.bf16.msra.mxu1 %v1870_v48  ;;  %v1093_v48 = vld [vmem:[%s2538_s7 + $0x18] sm:$0xff]  ;;  %v1099_v57 = vld [vmem:[%s2538_s7 + $0x48] sm:$0xff]  ;;  %v1100_v59 = vld [vmem:[%s2538_s7 + $0x50] sm:$0xff] }
  0x2b   : > { %1784 = vmatpush3.bf16.msra.mxu0 %v1781_v25  ;;  %1872 = vmatprep.subr.bf16.mxu1 %v2014_v4  ;;  %v1342_v25 = vld [vmem:[%s2532_s1 + $0x150] sm:$0xff]  ;;  %v1101_v60 = vld [vmem:[%s2538_s7 + $0x58] sm:$0xff]  ;;  %v1102_v62 = vld [vmem:[%s2538_s7 + $0x60] sm:$0xff] }
  0x2c   : > { %1786 = vmatprep.subr.bf16.mxu0 %v1785_v33  ;;  %v1845_v27 = vpack.c.bf16 %v1343_v26, %v1342_v25  ;;  %v1103_v63 = vld [vmem:[%s2538_s7 + $0x68] sm:$0xff]  ;;  %v1104_v6 = vld [vmem:[%s2538_s7 + $0x70] sm:$0xff]  ;;  %v1105_v7 = vld [vmem:[%s2538_s7 + $0x78] sm:$0xff] }
  0x2d   : > { %v1348_v15 = vld [vmem:[%s2533_s2] ss:$0 sm:$0xff]  ;;  %v808_v40 = vld [vmem:[%s2535_s4 + $0x30] sm:$0xff]  ;;  %v809_v41 = vld [vmem:[%s2535_s4 + $0x38] sm:$0xff] }
  0x2e   : > { %1874 = vmatpush3.bf16.msra.mxu1 %v1873_v36 }
  0x2f   : > { %1788 = vmatpush3.bf16.msra.mxu0 %v1785_v33  ;;  %v1853_v33 = vpack.c.bf16 %v1347_v32, %v1346_v31  ;;  %1875 = vmatprep.subr.bf16.mxu1 %v2014_v4  ;;  %v804_v32 = vld [vmem:[%s2535_s4 + $0x10] sm:$0xff] }
  0x30   : > { %1790 = vmatprep.subr.bf16.mxu0 %v1789_v39 }
  0x33   : > { %1792 = vmatpush3.bf16.msra.mxu0 %v1789_v39  ;;  %v1876_v39 = vpack.c.bf16 %v1363_v38, %v1362_v37  ;;  %v806_v37 = vld [vmem:[%s2535_s4 + $0x20] sm:$0xff]  ;;  %v807_v38 = vld [vmem:[%s2535_s4 + $0x28] sm:$0xff] }
  0x34   : > { %1794 = vmatprep.subr.bf16.mxu0 %v1793_v45 }
  0x35   : > { %1877 = vmatpush3.bf16.msra.mxu1 %v1876_v39  ;;  %v1888_v39 = vpack.c.bf16 %v807_v38, %v806_v37 }
  0x36   : > { %1549 = vmatmul.mubr.f32.vlgmr.msra.gmra.mrb[0].mxu0 %v2099_v3  ;;  %1878 = vmatprep.subr.bf16.mxu1 %v2014_v4 }
  0x37   : > { %1796 = vmatpush3.bf16.msra.mxu0 %v1793_v45  ;;  %1583 = vmatprep.mubr.f32.mxu0 %v2093_v0  ;;  %v1336_v0 = vld [vmem:[%s2532_s1 + $0x120] sm:$0xff]  ;;  %v1091_v45 = vld [vmem:[%s2538_s7 + $0x8] sm:$0xff] }
  0x38   : > { %1798 = vmatprep.subr.bf16.mxu0 %v1797_v49  ;;  %v1833_v19 = vpack.c.bf16 %v1337_v18, %v1336_v0  ;;  %v1930_v46 = vpack.c.bf16 %v1091_v45, %v1090_v44  ;;  %v810_v44 = vld [vmem:[%s2535_s4 + $0x40] sm:$0xff]  ;;  %v811_v45 = vld [vmem:[%s2535_s4 + $0x48] sm:$0xff] }
  0x39   : > { %1880 = vmatpush3.bf16.msra.mxu1 %v1879_v42  ;;  %v1891_v42 = vpack.c.bf16 %v809_v41, %v808_v40 }
  0x3a   : > { %1881 = vmatprep.subr.bf16.mxu1 %v2014_v4 }
  0x3b   : > { %1800 = vmatpush3.bf16.msra.mxu0 %v1797_v49  ;;  %v1933_v49 = vpack.c.bf16 %v1093_v48, %v1092_v47  ;;  %v812_v47 = vld [vmem:[%s2535_s4 + $0x50] sm:$0xff]  ;;  %v813_v48 = vld [vmem:[%s2535_s4 + $0x58] sm:$0xff] }
  0x3c   : > { %1802 = vmatprep.subr.bf16.mxu0 %v1801_v52 }
  0x3f   : > { %1804 = vmatpush3.bf16.msra.mxu0 %v1801_v52  ;;  %v1936_v52 = vpack.c.bf16 %v1095_v51, %v1094_v50  ;;  %v814_v50 = vld [vmem:[%s2535_s4 + $0x60] sm:$0xff]  ;;  %v815_v51 = vld [vmem:[%s2535_s4 + $0x68] sm:$0xff] }
  0x40   : > { %1806 = vmatprep.subr.bf16.mxu0 %v1805_v55 }
  0x43   : > { %1808 = vmatpush3.bf16.msra.mxu0 %v1805_v55  ;;  %v1939_v55 = vpack.c.bf16 %v1097_v54, %v1096_v53  ;;  %v816_v53 = vld [vmem:[%s2535_s4 + $0x70] sm:$0xff]  ;;  %v817_v54 = vld [vmem:[%s2535_s4 + $0x78] sm:$0xff] }
  0x44   : > { %1810 = vmatprep.subr.bf16.mxu0 %v1809_v58 }
  0x47   : > { %1812 = vmatpush3.bf16.msra.mxu0 %v1809_v58  ;;  %v1942_v58 = vpack.c.bf16 %v1099_v57, %v1098_v56  ;;  %v1367_v56 = vld [vmem:[%s2535_s4 + $0x100] sm:$0xff]  ;;  %v1368_v57 = vld [vmem:[%s2535_s4 + $0x108] sm:$0xff] }
  0x48   : > { %1814 = vmatprep.subr.bf16.mxu0 %v1813_v61 }
  0x4b   : > { %1816 = vmatpush3.bf16.msra.mxu0 %v1813_v61  ;;  %v1945_v61 = vpack.c.bf16 %v1101_v60, %v1100_v59  ;;  %v1369_v59 = vld [vmem:[%s2535_s4 + $0x110] sm:$0xff]  ;;  %v1370_v60 = vld [vmem:[%s2535_s4 + $0x118] sm:$0xff] }
  0x4c   : > { %1818 = vmatprep.subr.bf16.mxu0 %v1817_v5 }
  0x4f   : > { %1820 = vmatpush3.bf16.msra.mxu0 %v1817_v5  ;;  %v1948_v5 = vpack.c.bf16 %v1103_v63, %v1102_v62  ;;  %v1371_v62 = vld [vmem:[%s2535_s4 + $0x120] sm:$0xff]  ;;  %v1372_v63 = vld [vmem:[%s2535_s4 + $0x128] sm:$0xff] }
  0x50   : > { %1822 = vmatprep.subr.bf16.mxu0 %v1821_v8 }
  0x53   : > { %1824 = vmatpush3.bf16.msra.mxu0 %v1821_v8  ;;  %v1951_v8 = vpack.c.bf16 %v1105_v7, %v1104_v6  ;;  %v1373_v6 = vld [vmem:[%s2535_s4 + $0x130] sm:$0xff] }
  0x54   : > { %1826 = vmatprep.subr.bf16.mxu0 %v1825_v11 }
  0x56   : > { %1584 = vmatmul.mubr.f32.vlgmr.msra.gmra.mrb[0].mxu0 %v2097_v2  ;;  %v1341_v2 = vld [vmem:[%s2532_s1 + $0x148] sm:$0xff] }
  0x57   : > { %1828 = vmatpush3.bf16.msra.mxu0 %v1825_v11  ;;  %1618 = vmatprep.mubr.f32.mxu0 %v682_v17  ;;  %v1841_v24 = vpack.c.bf16 %v1341_v2, %v1340_v23  ;;  %v1110_v11 = vsel %vm679_vm0, %v1108_v9, %v1109_v10  ;;  %v1349_v17 = vld [vmem:[%s2534_s3] ss:$0 sm:$0xff]  ;;  %v1376_v9 = vld [vmem:[%s2535_s4 + $0x148] sm:$0xff] }
  0x58   : > { %1830 = vmatprep.subr.bf16.mxu0 %v1829_v16  ;;  %v802_v2 = vld [vmem:[%s2535_s4] sm:$0xff] }
  0x5b   : > { %1832 = vmatpush3.bf16.msra.mxu0 %v1829_v16 }
  0x5c   : > { %1834 = vmatprep.subr.bf16.mxu0 %v1833_v19 }
  0x5f   : > { %1836 = vmatpush3.bf16.msra.mxu0 %v1833_v19 }
  0x60   : > { %1838 = vmatprep.subr.bf16.mxu0 %v1837_v22 }
  0x63   : > { %1840 = vmatpush3.bf16.msra.mxu0 %v1837_v22 }
  0x64   : > { %1842 = vmatprep.subr.bf16.mxu0 %v1841_v24 }
  0x67   : > { %1844 = vmatpush3.bf16.msra.mxu0 %v1841_v24  ;;  %v803_v24 = vld [vmem:[%s2535_s4 + $0x8] sm:$0xff] }
  0x68   : > { %1846 = vmatprep.subr.bf16.mxu0 %v1845_v27  ;;  %v1882_v31 = vpack.c.bf16 %v803_v24, %v802_v2 }
  0x6b   : > { %1848 = vmatpush3.bf16.msra.mxu0 %v1845_v27 }
  0x6c   : > { %1850 = vmatprep.subr.bf16.mxu0 %v1849_v30 }
  0x6f   : > { %1852 = vmatpush3.bf16.msra.mxu0 %v1849_v30 }
  0x70   : > { %1854 = vmatprep.subr.bf16.mxu0 %v1853_v33 }
  0x73   : > { %1856 = vmatpush3.bf16.msra.mxu0 %v1853_v33  ;;  %v805_v33 = vld [vmem:[%s2535_s4 + $0x18] sm:$0xff] }
  0x74   : > { %1929 = vmatprep.subr.bf16.mxu0 %v2014_v4  ;;  %v1885_v36 = vpack.c.bf16 %v805_v33, %v804_v32 }
  0x76   : > { %1619 = vmatmul.mubr.f32.vlgmr.msra.gmra.mrb[0].mxu0 %v681_v13  ;;  %v785_v13 = vshrl.u32 %v784_v12, 7  ;;  %v1378_v12 = vld [vmem:[%s2535_s4 + $0x158] sm:$0xff] }
  0x77   : > { %1758 = vmatprep.mubr.msk.f32.mxu0 %vm2015_vm1, %v2016_v43  ;;  %1931 = vmatpush3.bf16.msra.mxu0 %v1930_v46  ;;  %v1894_v46 = vpack.c.bf16 %v811_v45, %v810_v44 }
  0x78   : > { %1932 = vmatprep.subr.bf16.mxu0 %v2014_v4  ;;  %v786_v14 = vadd.s32 8, %v785_v13  ;;  %v2383_v19 = vadd.s32 4294967295, %v785_v13 }
  0x7a   : > { %v789_v0 = vadd.s32 4294967295, %v786_v14  ;;  %vm790_vm3 = vcmp.ge.s32.totalorder %v2383_v19, 0  ;;  %v1379_v14 = vld [vmem:[%s2535_s4 + $0x160] sm:$0xff] }
  0x7b   : > { %1934 = vmatpush3.bf16.msra.mxu0 %v1933_v49  ;;  %v1897_v49 = vpack.c.bf16 %v813_v48, %v812_v47 }
  0x7c   : > { %1935 = vmatprep.subr.bf16.mxu0 %v2014_v4  ;;  %vm793_vm2 = vcmp.lt.s32.totalorder %v789_v0, 8  ;;  %v1382_v0 = vld [vmem:[%s2535_s4 + $0x178] sm:$0xff] }
  0x7f   : > { %1937 = vmatpush3.bf16.msra.mxu0 %v1936_v52  ;;  %v1900_v52 = vpack.c.bf16 %v815_v51, %v814_v50 }
  0x80   : > { %1938 = vmatprep.subr.bf16.mxu0 %v2014_v4 }
  0x83   : > { %1940 = vmatpush3.bf16.msra.mxu0 %v1939_v55  ;;  %v1903_v55 = vpack.c.bf16 %v817_v54, %v816_v53 }
  0x84   : > { %1941 = vmatprep.subr.bf16.mxu0 %v2014_v4 }
  0x87   : > { %1943 = vmatpush3.bf16.msra.mxu0 %v1942_v58  ;;  %v1906_v58 = vpack.c.bf16 %v1368_v57, %v1367_v56 }
  0x88   : > { %1944 = vmatprep.subr.bf16.mxu0 %v2014_v4 }
  0x8b   : > { %1946 = vmatpush3.bf16.msra.mxu0 %v1945_v61  ;;  %v1909_v61 = vpack.c.bf16 %v1370_v60, %v1369_v59 }
  0x8c   : > { %1947 = vmatprep.subr.bf16.mxu0 %v2014_v4 }
  0x8f   : > { %1949 = vmatpush3.bf16.msra.mxu0 %v1948_v5  ;;  %v1912_v5 = vpack.c.bf16 %v1372_v63, %v1371_v62 }
  0x90   : > { %1950 = vmatprep.subr.bf16.mxu0 %v2014_v4 }
  0x93   : > { %1952 = vmatpush3.bf16.msra.mxu0 %v1951_v8  ;;  %v1375_v8 = vld [vmem:[%s2535_s4 + $0x140] sm:$0xff] }
  0x94   : > { %v1918_v10 = vpack.c.bf16 %v1376_v9, %v1375_v8 }
  0x96   : > { %1759 = vmatmul.mubr.f32.vlgmr.msra.gmra.mrb[2].mxu0 %v1110_v11  ;;  %v1377_v11 = vld [vmem:[%s2535_s4 + $0x150] sm:$0xff] }
  0x97   : > { %v1921_v13 = vpack.c.bf16 %v1378_v12, %v1377_v11 }
 0x149   : > { %v1620_v16 = vpop.f32.mrb[0].mxu0 }
 0x14a   : > { %v770_v18 = vmul.f32 %v1620_v16, %v1348_v15  ;;  %v751_v1 = vpop.f32.mrb[1].mxu0 }
 0x14b   : > { %v769_v3 = vmul.f32 %v1348_v15, %v751_v1  ;;  %v1380_v15 = vld [vmem:[%s2535_s4 + $0x168] sm:$0xff] }
 0x14c   : > { %v779_v20 = vadd.f32 %v1349_v17, %v770_v18  ;;  %v1924_v16 = vpack.c.bf16 %v1380_v15, %v1379_v14 }
 0x14d   : > { %v778_v21 = vadd.f32 %v1349_v17, %v769_v3  ;;  %v1381_v17 = vld [vmem:[%s2535_s4 + $0x170] sm:$0xff]  ;;  %v1385_v3 = vld [vmem:[%s2539_s8] ss:$0 sm:$0xff] }
 0x14e   : > { %v781_v22 = vmax.f32 %v779_v20, 0.0  ;;  %v1927_v18 = vpack.c.bf16 %v1382_v0, %v1381_v17 }
 0x14f   : > { %v780_v23 = vmax.f32 %v778_v21, 0.0  ;;  %v1386_v21 = vld [vmem:[%s2540_s9] ss:$0 sm:$0xff] }
 0x150   : > { %v801_v25 = vsel %vm793_vm2, %v781_v22, 0.0  ;;  %v1383_v22 = vld [vmem:[%s2536_s5] ss:$0 sm:$0xff] }
 0x151   : > { %v838_v26 = vrot.slane %v801_v25, 1  ;;  %v1000_v27 = vrot.slane %v801_v25, 2  ;;  %v800_v28 = vsel %vm790_vm3, %v780_v23, 0.0 }
 0x152   : > { %v837_v29 = vrot.slane %v800_v28, 1  ;;  %v999_v30 = vrot.slane %v800_v28, 2 }
 0x154   : > { %v839_v34 = vsel %vm679_vm0, %v837_v29, %v838_v26  ;;  %v2401_v35 = vsel %vm998_vm4, %v999_v30, %v1000_v27 }
 0x155   : > { %1654 = vmatmul.mubr.f32.vlgmr.msra.gmra.mrb[0].mxu1 %v839_v34 }
 0x156   : > { %1883 = vmatpush3.bf16.msra.mxu1 %v1882_v31  ;;  %1688 = vmatprep.mubr.msk.f32.mxu1 %vm2015_vm1, %v2016_v43 }
 0x157   : > { %1884 = vmatprep.subr.bf16.mxu1 %v2014_v4 }
 0x15a   : > { %1886 = vmatpush3.bf16.msra.mxu1 %v1885_v36 }
 0x15b   : > { %1887 = vmatprep.subr.bf16.mxu1 %v2014_v4 }
 0x15e   : > { %1889 = vmatpush3.bf16.msra.mxu1 %v1888_v39 }
 0x15f   : > { %1890 = vmatprep.subr.bf16.mxu1 %v2014_v4 }
 0x162   : > { %1892 = vmatpush3.bf16.msra.mxu1 %v1891_v42 }
 0x163   : > { %1893 = vmatprep.subr.bf16.mxu1 %v2014_v4 }
 0x166   : > { %1895 = vmatpush3.bf16.msra.mxu1 %v1894_v46 }
 0x167   : > { %1896 = vmatprep.subr.bf16.mxu1 %v2014_v4 }
 0x169   : > { %v1178_v1 = vpop.f32.mrb[2].mxu0 }
 0x16a   : > { %1898 = vmatpush3.bf16.msra.mxu1 %v1897_v49  ;;  %v1760_v19 = vpop.f32.mrb[3].mxu0  ;;  %v1189_v20 = vmul.f32 %v1385_v3, %v1178_v1 }
 0x16b   : > { %1899 = vmatprep.subr.bf16.mxu1 %v2014_v4 }
 0x16c   : > { %v1197_v2 = vadd.f32 %v1386_v21, %v1189_v20 }
 0x16e   : > { %1901 = vmatpush3.bf16.msra.mxu1 %v1900_v52 }
 0x16f   : > { %1902 = vmatprep.subr.bf16.mxu1 %v2014_v4 }
 0x172   : > { %1904 = vmatpush3.bf16.msra.mxu1 %v1903_v55 }
 0x173   : > { %1905 = vmatprep.subr.bf16.mxu1 %v2014_v4 }
 0x175   : > { %1689 = vmatmul.mubr.msk.f32.vlgmr.msra.gmra.mrb[0].mxu1 %vm790_vm3, %v780_v23  ;;  %v1384_v23 = vld [vmem:[%s2537_s6] ss:$0 sm:$0xff] }
 0x176   : > { %1907 = vmatpush3.bf16.msra.mxu1 %v1906_v58  ;;  %1723 = vmatprep.mubr.msk.f32.mxu1 %vm2015_vm1, %v2016_v43  ;;  %v1374_v43 = vld [vmem:[%s2535_s4 + $0x138] sm:$0xff] }
 0x177   : > { %1908 = vmatprep.subr.bf16.mxu1 %v2014_v4  ;;  %v1915_v7 = vpack.c.bf16 %v1374_v43, %v1373_v6 }
 0x17a   : > { %1910 = vmatpush3.bf16.msra.mxu1 %v1909_v61 }
 0x17b   : > { %1911 = vmatprep.subr.bf16.mxu1 %v2014_v4 }
 0x17e   : > { %1913 = vmatpush3.bf16.msra.mxu1 %v1912_v5 }
 0x17f   : > { %1914 = vmatprep.subr.bf16.mxu1 %v2014_v4 }
 0x182   : > { %1916 = vmatpush3.bf16.msra.mxu1 %v1915_v7 }
 0x183   : > { %1917 = vmatprep.subr.bf16.mxu1 %v2014_v4 }
 0x186   : > { %1919 = vmatpush3.bf16.msra.mxu1 %v1918_v10 }
 0x187   : > { %1920 = vmatprep.subr.bf16.mxu1 %v2014_v4 }
 0x18a   : > { %1922 = vmatpush3.bf16.msra.mxu1 %v1921_v13 }
 0x18b   : > { %1923 = vmatprep.subr.bf16.mxu1 %v2014_v4 }
 0x18e   : > { %1925 = vmatpush3.bf16.msra.mxu1 %v1924_v16 }
 0x18f   : > { %1926 = vmatprep.subr.bf16.mxu1 %v2014_v4 }
 0x192   : > { %1928 = vmatpush3.bf16.msra.mxu1 %v1927_v18 }
 0x195   : > { %1724 = vmatmul.mubr.f32.vlgmr.msra.gmra.mrb[0].mxu1 %v2401_v35 }
 0x268   : > { %v1069_v4 = vpop.f32.mrb[0].mxu1 }
 0x269   : > { %v1081_v24 = vmul.f32 %v1383_v22, %v1069_v4  ;;  %v1725_v25 = vpop.f32.mrb[1].mxu1 }
 0x26b   : > { %v1089_v26 = vadd.f32 %v1384_v23, %v1081_v24 }
 0x26d   : > { %v1198_v27 = vadd.f32 %v1197_v2, %v1089_v26 }
 0x26f   : > { %v1199_v28 = vmax.f32 %v1198_v27, 0.0 }
 0x271   : > { %1200 = vst [vmem:[%s2104_s24] sm:$0xff] %v1199_v28 }
 0x272 PF: > { %s20_s15 = sadd.s32 1, %s2012_s15   ;;  %s2542_s13 = smov %s2008_s14 }
 0x273   : > { %p17_p5 = scmp.ge.s32.totalorder %s20_s15, 4   ;;  %s2543_s14 = smov %s2545_s16 }
 0x275   :  { %19 = sbr.rel (!%p17_p5) target bundleno = 2 (0x2), region = 186 }
 0x27c   :  { %1226 = vsyncmov [#allocation3] }
 0x27f   :  { %s1227_s20 = vpop.sfrf %1226 }
 0x280   :  { %p1389_p6 = scmp.ne.s32.totalorder %s1227_s20, 0 }
 0x282   :  { %1231 = shalt.err (%p1389_p6)  }
 0x283   :  { %1233 = vsyncmov [#allocation3 + $0x1] }
 0x286   :  { %s1234_s21 = vpop.sfrf %1233 }
 0x287   :  { %p1390_p7 = scmp.ne.s32.totalorder %s1234_s21, 0 }
 0x289   :  { %1238 = shalt.err (%p1390_p7)  }

</bundles_post_ra>
